<compile_context>
chip_gen: v5e
topology: v5e:2x2
jax: 0.10.0
libtpu: 0.0.40
codegen_flags: <defaults>
</compile_context>

<pallas_src>
import functools

import jax
import jax.numpy as jnp
from jax import lax
from jax.experimental import pallas as pl
from jax.experimental.pallas import tpu as pltpu


def _ce_label_smooth_kernel(
    logits_ref, targets_ref, out_ref, *, epsilon, num_classes, num_rows
):
    i = pl.program_id(0)
    tile_n, c = logits_ref.shape

    # Init the resident scalar accumulator on the first grid step.
    @pl.when(i == 0)
    def _init():
        out_ref[0, 0] = jnp.float32(0.0)

    x = logits_ref[...].astype(jnp.float32)        # (tile_n, C), f32 math
    t = targets_ref[...]                           # (tile_n, 1) int32

    # Numerically-stable logsumexp per row (class axis = lanes).
    m = jnp.max(x, axis=1, keepdims=True)                               # (tile_n, 1)
    lse = m + jnp.log(jnp.sum(jnp.exp(x - m), axis=1, keepdims=True))   # (tile_n, 1)

    # Row sum of logits (for the uniform eps/C term).
    sum_x = jnp.sum(x, axis=1, keepdims=True)                           # (tile_n, 1)

    # Gather x[i, t_i] via iota compare + masked row-sum (no one-hot temp kept).
    class_ids = lax.broadcasted_iota(jnp.int32, (tile_n, c), 1)
    x_t = jnp.sum(jnp.where(t == class_ids, x, 0.0), axis=1, keepdims=True)

    # Closed-form per-row smoothed-CE loss.
    loss_row = (
        lse
        - (1.0 - epsilon) * x_t
        - (epsilon / float(num_classes)) * sum_x
    )                                                                   # (tile_n, 1)

    # Mask out-of-bounds remainder rows of the last block before reducing.
    row_ids = i * tile_n + lax.broadcasted_iota(jnp.int32, (tile_n, 1), 0)
    valid = row_ids < num_rows
    partial = jnp.sum(jnp.where(valid, loss_row, 0.0))

    out_ref[0, 0] = out_ref[0, 0] + partial

    # Final divide by the true batch size on the last step only.
    @pl.when(i == pl.num_programs(0) - 1)
    def _finalize():
        out_ref[0, 0] = out_ref[0, 0] / jnp.float32(num_rows)


def cross_entropy_label_smooth(logits, targets, *, num_classes, epsilon,
                               tile_rows=None):
    n, c = logits.shape
    assert c == num_classes, (c, num_classes)
    targets_2d = targets.astype(jnp.int32).reshape(n, 1)

    itemsize = jnp.dtype(logits.dtype).itemsize
    if tile_rows is None:
        # Keep the double-buffered logits tile under ~8 MiB of VMEM.
        budget_bytes = 8 * 1024 * 1024
        tile_rows = (budget_bytes // (2 * c * itemsize)) // 8 * 8
        tile_rows = int(max(8, min(1024, tile_rows)))
    if n <= tile_rows:
        tile_rows = n  # one full-array block (always a legal block shape)
    num_tiles = pl.cdiv(n, tile_rows)

    kernel = functools.partial(
        _ce_label_smooth_kernel,
        epsilon=float(epsilon),
        num_classes=int(num_classes),
        num_rows=int(n),
    )

    cost = pl.CostEstimate(
        flops=5 * n * c,
        transcendentals=n * c,
        bytes_accessed=n * c * itemsize + n * 4 + 4,
    )

    out = pl.pallas_call(
        kernel,
        out_shape=jax.ShapeDtypeStruct((1, 1), jnp.float32),
        grid=(num_tiles,),
        in_specs=[
            # Lane-dense (TILE_N, C) logits block, streamed over the batch axis.
            pl.BlockSpec((tile_rows, c), lambda i: (i, 0)),
            # Matching (TILE_N, 1) targets block.
            pl.BlockSpec((tile_rows, 1), lambda i: (i, 0)),
        ],
        # Scalar loss accumulator, resident in SMEM across the whole grid.
        out_specs=pl.BlockSpec((1, 1), lambda i: (0, 0), memory_space=pltpu.SMEM),
        compiler_params=pltpu.CompilerParams(
            # Output block is reused across the batch axis (accumulator),
            # so this axis must be sequential.
            dimension_semantics=("arbitrary",),
        ),
        cost_estimate=cost,
    )(logits, targets_2d)
    return out[0, 0]


def _reference(logits, targets, num_classes, epsilon):
    # Pure-JAX reference mirroring the PyTorch module.
    log_probs = jax.nn.log_softmax(logits.astype(jnp.float32), axis=1)
    onehot = jax.nn.one_hot(targets, num_classes, dtype=jnp.float32)
    smoothed = (1.0 - epsilon) * onehot + epsilon / num_classes
    return jnp.sum(jnp.mean(-smoothed * log_probs, axis=0))


if __name__ == "__main__":
    epsilon = 0.1
    key = jax.random.PRNGKey(0)

    # Test 1: toy CIFAR-like shape (single block).
    num_classes = 10
    batch = 8
    k1, k2, key = jax.random.split(key, 3)
    logits = jax.random.normal(k1, (batch, num_classes), dtype=jnp.float32)
    targets = jax.random.randint(k2, (batch,), 0, num_classes, dtype=jnp.int32)
    loss = cross_entropy_label_smooth(
        logits, targets, num_classes=num_classes, epsilon=epsilon
    )
    loss = jax.block_until_ready(loss)
    ref = _reference(logits, targets, num_classes, epsilon)
    assert jnp.allclose(loss, ref, atol=1e-5, rtol=1e-5), (loss, ref)

    # Test 2: multi-tile grid with a partial (masked) last block.
    num_classes2 = 384
    batch2 = 20
    k3, k4, _ = jax.random.split(key, 3)
    logits2 = jax.random.normal(k3, (batch2, num_classes2), dtype=jnp.float32)
    targets2 = jax.random.randint(k4, (batch2,), 0, num_classes2, dtype=jnp.int32)
    loss2 = cross_entropy_label_smooth(
        logits2, targets2, num_classes=num_classes2, epsilon=epsilon, tile_rows=8
    )
    loss2 = jax.block_until_ready(loss2)
    ref2 = _reference(logits2, targets2, num_classes2, epsilon)
    assert jnp.allclose(loss2, ref2, atol=1e-5, rtol=1e-5), (loss2, ref2)

    print("KERNEL_OK")
</pallas_src>

<mosaic_0001>
module attributes {stable_mosaic.version = 11 : i64} {
  func.func @_ce_label_smooth_kernel(%arg0: i32, %arg1: memref<8x10xf32, #tpu.memory_space<vmem>>, %arg2: memref<8x1xi32, #tpu.memory_space<vmem>>, %arg3: memref<1x1xf32, #tpu.memory_space<smem>>) attributes {dimension_semantics = [#tpu.dimension_semantics<arbitrary>], iteration_bounds = array<i64: 1>, scalar_prefetch = 0 : i64, scratch_operands = 0 : i64, tpu.core_type = #tpu.core_type<tc>, window_params = [{transform_indices = @transform_0, window_bounds = array<i64: 8, 10>}, {transform_indices = @transform_1, window_bounds = array<i64: 8, 1>}, {transform_indices = @transform_2, window_bounds = array<i64: 1, 1>}]} {
    %c0_i32 = arith.constant 0 : i32
    %0 = arith.cmpi eq, %arg0, %c0_i32 : i32
    %1 = arith.extui %0 : i1 to i32
    %c0_i32_0 = arith.constant 0 : i32
    %2 = arith.cmpi ne, %1, %c0_i32_0 : i32
    scf.if %2 {
      %cst_19 = arith.constant 0.000000e+00 : f32
      %c0_20 = arith.constant 0 : index
      %c0_21 = arith.constant 0 : index
      %47 = memref.load %arg3[%c0_20, %c0_21] : memref<1x1xf32, #tpu.memory_space<smem>>
      memref.store %cst_19, %arg3[%c0_20, %c0_21] : memref<1x1xf32, #tpu.memory_space<smem>>
    } else {
    }
    %c0 = arith.constant 0 : index
    %c0_1 = arith.constant 0 : index
    %3 = vector.load %arg1[%c0, %c0_1] : memref<8x10xf32, #tpu.memory_space<vmem>>, vector<8x10xf32>
    %c0_2 = arith.constant 0 : index
    %c0_3 = arith.constant 0 : index
    %4 = vector.load %arg2[%c0_2, %c0_3] : memref<8x1xi32, #tpu.memory_space<vmem>>, vector<8x1xi32>
    %cst = arith.constant dense<0xFF800000> : vector<8xf32>
    %5 = vector.multi_reduction <maximumf>, %3, %cst [1] : vector<8x10xf32> to vector<8xf32>
    %6 = vector.shape_cast %5 : vector<8xf32> to vector<8x1xf32>
    %7 = vector.broadcast %6 : vector<8x1xf32> to vector<8x10xf32>
    %8 = arith.subf %3, %7 : vector<8x10xf32>
    %9 = math.exp %8 : vector<8x10xf32>
    %cst_4 = arith.constant dense<0.000000e+00> : vector<8xf32>
    %10 = vector.multi_reduction <add>, %9, %cst_4 [1] : vector<8x10xf32> to vector<8xf32>
    %11 = vector.shape_cast %10 : vector<8xf32> to vector<8x1xf32>
    %12 = math.log %11 : vector<8x1xf32>
    %13 = arith.addf %6, %12 : vector<8x1xf32>
    %cst_5 = arith.constant dense<0.000000e+00> : vector<8xf32>
    %14 = vector.multi_reduction <add>, %3, %cst_5 [1] : vector<8x10xf32> to vector<8xf32>
    %15 = vector.shape_cast %14 : vector<8xf32> to vector<8x1xf32>
    %16 = tpu.iota {dimensions = array<i32: 1>} : vector<8x10xi32>
    %17 = vector.broadcast %4 : vector<8x1xi32> to vector<8x10xi32>
    %18 = arith.cmpi eq, %17, %16 : vector<8x10xi32>
    %cst_6 = arith.constant 0.000000e+00 : f32
    %19 = vector.broadcast %cst_6 : f32 to vector<8x10xf32>
    %20 = arith.select %18, %3, %19 : vector<8x10xi1>, vector<8x10xf32>
    %cst_7 = arith.constant dense<0.000000e+00> : vector<8xf32>
    %21 = vector.multi_reduction <add>, %20, %cst_7 [1] : vector<8x10xf32> to vector<8xf32>
    %22 = vector.shape_cast %21 : vector<8xf32> to vector<8x1xf32>
    %cst_8 = arith.constant 0.899999976 : f32
    %23 = vector.broadcast %cst_8 : f32 to vector<8x1xf32>
    %24 = arith.mulf %23, %22 : vector<8x1xf32>
    %25 = arith.subf %13, %24 : vector<8x1xf32>
    %cst_9 = arith.constant 0.00999999977 : f32
    %26 = vector.broadcast %cst_9 : f32 to vector<8x1xf32>
    %27 = arith.mulf %26, %15 : vector<8x1xf32>
    %28 = arith.subf %25, %27 : vector<8x1xf32>
    %c8_i32 = arith.constant 8 : i32
    %29 = arith.muli %arg0, %c8_i32 : i32
    %30 = tpu.iota {dimensions = array<i32: 0>} : vector<8x1xi32>
    %31 = vector.broadcast %29 : i32 to vector<8x1xi32>
    %32 = arith.addi %31, %30 : vector<8x1xi32>
    %c8_i32_10 = arith.constant 8 : i32
    %33 = vector.broadcast %c8_i32_10 : i32 to vector<8x1xi32>
    %34 = arith.cmpi slt, %32, %33 : vector<8x1xi32>
    %cst_11 = arith.constant 0.000000e+00 : f32
    %35 = vector.broadcast %cst_11 : f32 to vector<8x1xf32>
    %36 = arith.select %34, %28, %35 : vector<8x1xi1>, vector<8x1xf32>
    %37 = vector.shape_cast %36 : vector<8x1xf32> to vector<1x8x1xf32>
    %cst_12 = arith.constant dense<0.000000e+00> : vector<1xf32>
    %38 = vector.multi_reduction <add>, %37, %cst_12 [1, 2] : vector<1x8x1xf32> to vector<1xf32>
    %39 = vector.shape_cast %38 : vector<1xf32> to vector<1x1x1xf32>
    %40 = vector.extract %39[0, 0, 0] : f32 from vector<1x1x1xf32>
    %c0_13 = arith.constant 0 : index
    %c0_14 = arith.constant 0 : index
    %41 = memref.load %arg3[%c0_13, %c0_14] : memref<1x1xf32, #tpu.memory_space<smem>>
    %42 = arith.addf %41, %40 : f32
    %c0_15 = arith.constant 0 : index
    %c0_16 = arith.constant 0 : index
    %43 = memref.load %arg3[%c0_15, %c0_16] : memref<1x1xf32, #tpu.memory_space<smem>>
    memref.store %42, %arg3[%c0_15, %c0_16] : memref<1x1xf32, #tpu.memory_space<smem>>
    %c0_i32_17 = arith.constant 0 : i32
    %44 = arith.cmpi eq, %arg0, %c0_i32_17 : i32
    %45 = arith.extui %44 : i1 to i32
    %c0_i32_18 = arith.constant 0 : i32
    %46 = arith.cmpi ne, %45, %c0_i32_18 : i32
    scf.if %46 {
      %c0_19 = arith.constant 0 : index
      %c0_20 = arith.constant 0 : index
      %47 = memref.load %arg3[%c0_19, %c0_20] : memref<1x1xf32, #tpu.memory_space<smem>>
      %cst_21 = arith.constant 8.000000e+00 : f32
      %48 = arith.divf %47, %cst_21 : f32
      %c0_22 = arith.constant 0 : index
      %c0_23 = arith.constant 0 : index
      %49 = memref.load %arg3[%c0_22, %c0_23] : memref<1x1xf32, #tpu.memory_space<smem>>
      memref.store %48, %arg3[%c0_22, %c0_23] : memref<1x1xf32, #tpu.memory_space<smem>>
    } else {
    }
    return
  }
  func.func @transform_0(%arg0: i32) -> (i32, i32) {
    %c0_i32 = arith.constant 0 : i32
    %c0_i32_0 = arith.constant 0 : i32
    return %arg0, %c0_i32 : i32, i32
  }
  func.func @transform_1(%arg0: i32) -> (i32, i32) {
    %c0_i32 = arith.constant 0 : i32
    %c0_i32_0 = arith.constant 0 : i32
    return %arg0, %c0_i32 : i32, i32
  }
  func.func @transform_2(%arg0: i32) -> (i32, i32) {
    %c0_i32 = arith.constant 0 : i32
    %c0_i32_0 = arith.constant 0 : i32
    %c0_i32_1 = arith.constant 0 : i32
    return %c0_i32, %c0_i32_0 : i32, i32
  }
}

</mosaic_0001>

<bundles_post_ra>
// kernel: tpu_custom_call.1
= control target key start
LH: loop header
LB: loop body
LE: loop exit
PB: predicated region body
PF: predicated region fallthrough
CT: control target
= control target key end

     0   :  { %vm20_vm0 = vcmask 80896   ;;  %s161_s0 = inlined_call_operand.vmem [shape: f32[8,10], index: 0, kind: input, shape index: {}]   ;;  %s162_s1 = inlined_call_operand.vmem [shape: s32[8,1], index: 1, kind: input, shape index: {}]   ;;  %s163_s2 = inlined_call_operand.hbm [shape: f32[1,1], index: 2, kind: output, shape index: {}]  }
   0x1   :  { %v18_v0 = vld [vmem:[%s161_s0] sm:$0xff] }
   0x2   :  { %7 = vsyncpa [#allocation3], 0  ;;  %v21_v1 = vsel %vm20_vm0, %v18_v0, -inf  ;;  %v130_v2 = vmov 0   ;;  %v19_v3 = vld [vmem:[%s162_s1] sm:$0xff]  ;;  %v33_v4 = vsel %vm20_vm0, %v18_v0, 0.0  ;;  %v36_v10 = vlaneseq }
   0x3   :  { %109 = vset.pattern.permute.xlu0 %v130_v2  ;;  %34 = vadd.xlane.f32.xlu2 %v33_v4  ;;  %vm57_vm2 = vcmask 7168   ;;  %v131_v26 = vmov 8.0   ;;  %s91_s13 = sshll.u32 %s163_s2, 4  ;;  %s132_s17 = smov [#allocation2]   ;;  %s92_s13 = int_to_ptr.hbm [resolvable:$true] %s91_s13 }
   0x4   :  { %22 = vmax.xlane.f32.xlu0 %v21_v1  ;;  %v37_v11 = vand.u32 127, %v36_v10 }
  0x18   :  { %39 = vperm.xlu0 %109, %v19_v3  }
  0x76   :  { %v35_v18 = vpop.xlane.xlu2 %34 }
  0x77   :  { %v23_v5 = vpop.xlane.xlu0 %22  ;;  %v48_v22 = vmul.f32 0.01, %v35_v18 }
  0x78   :  { %v24_v6 = vsub.f32 %v18_v0, %v23_v5 }
  0x7a   :  { %v25_v7 = vmul.f32 1.442695, %v24_v6 }
  0x7c   :  { %110 = vpow2.f32 %v25_v7 }
  0x82   :  { %v111_v8 = vpop.eup %110 }
  0x83   :  { %v27_v9 = vsel %vm20_vm0, %v111_v8, 0.0 }
  0x84   :  { %28 = vadd.xlane.f32.xlu1 %v27_v9 }
  0x8a   :  { %v40_v12 = vpop.permute.xlu0 %39 }
  0x8b   :  { %vm41_vm1 = vcmp.eq.s32.totalorder %v40_v12, %v37_v11 }
  0x8c   :  { %v42_v13 = vsel %vm41_vm1, %v18_v0, 0.0 }
  0x8d   :  { %v43_v14 = vsel %vm20_vm0, %v42_v13, 0.0 }
  0x8e   :  { %44 = vadd.xlane.f32.xlu1 %v43_v14 }
  0xf7   :  { %v29_v15 = vpop.xlane.xlu1 %28 }
  0xf8   :  { %112 = vlog2.f32 %v29_v15 }
  0xf9   :  { %114 = vrcp.f32 %v131_v26 }
  0xfe   :  { %v113_v16 = vpop.eup %112 }
  0xff   :  { %v31_v17 = vmul.f32 0.6931472, %v113_v16  ;;  %v115_v27 = vpop.eup %114 }
 0x100   :  { %v77_v28 = vmul.f32 8.0, %v115_v27  ;;  %vm81_vm3 = vweird.f32 %v115_v27 }
 0x101   :  { %v32_v19 = vadd.f32 %v31_v17, %v23_v5  ;;  %v45_v20 = vpop.xlane.xlu1 %44 }
 0x102   :  { %v46_v21 = vmul.f32 0.9, %v45_v20  ;;  %v78_v29 = vsub.f32 1.0, %v77_v28 }
 0x104   :  { %v47_v23 = vsub.f32 %v32_v19, %v46_v21  ;;  %v79_v33 = vmul.f32 %v115_v27, %v78_v29 }
 0x106   :  { %v49_v24 = vsub.f32 %v47_v23, %v48_v22  ;;  %v80_v36 = vadd.f32 %v115_v27, %v79_v33 }
 0x108   :  { %v58_v25 = vsel %vm57_vm2, %v49_v24, 0.0  ;;  %v82_v39 = vsel %vm81_vm3, %v115_v27, %v80_v36 }
 0x109   :  { %59 = vadd.xlane.f32.xlu2 %v58_v25 }
 0x17c   :  { %v60_v30 = vpop.xlane.xlu2 %59 }
 0x17d   :  { %v61_v31 = vrot.slane %v60_v30, 4 }
 0x17f   :  { %v62_v32 = vadd.f32 %v61_v31, %v60_v30 }
 0x181   :  { %v63_v34 = vrot.slane %v62_v32, 2 }
 0x183   :  { %v64_v35 = vadd.f32 %v63_v34, %v62_v32 }
 0x185   :  { %v65_v37 = vrot.slane %v64_v35, 1 }
 0x187   :  { %v66_v38 = vadd.f32 %v65_v37, %v64_v35 }
 0x189   :  { %101 = vpush %v66_v38 }
 0x18a   :  { %103 = vpush %v82_v39 }
 0x1ba   :  { %s102_s14 = spop %101 }
 0x1bb   :  { %s104_s15 = spop %103 }
 0x1bc   :  { %s84_s16 = smul.f32 %s104_s15, %s102_s14 }
 0x1be   :  { %85 = sst [smem:[#allocation2]] %s84_s16 }
 0x1bf   :  { %94 = dma.smem_to_hbm %s132_s17, 16, %s92_s13, [#allocation3]  }
 0x1c0   :  { %128 = dma.done.wait [#allocation3], 16  }
 0x1c1   :  { %129 = vsyncadd [#allocation3], 4294967280 }
 0x1c2   :  { %99 = sfence }
 0x1c3   :  { %100 = vsyncpa [#allocation3], 1 }

</bundles_post_ra>
